<compile_context>
chip_gen: v5e
topology: v5e:2x2
jax: 0.10.0
libtpu: 0.0.40
codegen_flags: <defaults>
</compile_context>

<pallas_src>
import functools

import jax
import jax.numpy as jnp
from jax.experimental import pallas as pl
from jax.experimental.pallas import tpu as pltpu

# Layer widths exactly as in the PyTorch module.
HIDDEN = (115, 78, 26, 46, 82, 106)
NUM_LAYERS = 7
PAD = 128          # every feature dim padded to one full lane tile
BIAS_ROWS = 8      # bias slab sublane-padded to 8 rows


def _round_up(x, m):
    return ((x + m - 1) // m) * m


def mlp_kernel(x_ref, w_ref, b_ref, out_ref):
    """x_ref: (TB, 128) f32; w_ref: (7*128, 128) bf16; b_ref: (8, 128) f32."""
    h = x_ref[...]                                         # f32 activations
    for layer in range(NUM_LAYERS):
        w = w_ref[layer * PAD:(layer + 1) * PAD, :]        # static slice, (128,128) bf16
        b = b_ref[layer:layer + 1, :]                      # static slice, (1,128) f32
        h = jnp.dot(h.astype(jnp.bfloat16), w,
                    preferred_element_type=jnp.float32)    # MXU bf16 x bf16 -> f32
        h = jnp.maximum(h + b, 0.0)                        # ReLU after every layer
    out_ref[...] = h


def pack_params(params):
    """Pack 7 (w, b) pairs into one bf16 weight slab and one f32 bias slab.

    w is stored as (in_features, out_features) (i.e. PyTorch W.T), zero-padded to
    (128, 128); padded bias lanes are 0 so ReLU keeps padding at exactly 0.
    """
    w_blocks, b_rows = [], []
    for w, b in params:
        fin, fout = w.shape
        assert fin <= PAD and fout <= PAD
        w_blocks.append(jnp.zeros((PAD, PAD), jnp.float32).at[:fin, :fout].set(w))
        b_rows.append(jnp.zeros((PAD,), jnp.float32).at[:fout].set(b.reshape(-1)))
    while len(b_rows) < BIAS_ROWS:
        b_rows.append(jnp.zeros((PAD,), jnp.float32))
    w_slab = jnp.concatenate(w_blocks, axis=0).astype(jnp.bfloat16)   # (896, 128)
    b_slab = jnp.stack(b_rows, axis=0)                                # (8, 128) f32
    return w_slab, b_slab


@functools.partial(jax.jit, static_argnames=("output_size", "block_b"))
def mlp_forward(x, w_slab, b_slab, *, output_size, block_b=256):
    batch, input_size = x.shape
    assert input_size <= PAD

    tb = min(block_b, _round_up(batch, 8))        # batch tile (multiple of 8 sublanes)
    batch_p = _round_up(batch, tb)

    # Host-side zero padding of x to a lane-dense (batch_p, 128) slab.
    x_p = jnp.zeros((batch_p, PAD), jnp.float32).at[:batch, :input_size].set(x)

    grid = (batch_p // tb,)
    flops = 2 * batch_p * PAD * PAD * NUM_LAYERS
    bytes_accessed = (x_p.size * 4 + w_slab.size * 2 + b_slab.size * 4
                      + batch_p * PAD * 4)

    out = pl.pallas_call(
        mlp_kernel,
        out_shape=jax.ShapeDtypeStruct((batch_p, PAD), jnp.float32),
        grid_spec=pltpu.PrefetchScalarGridSpec(
            num_scalar_prefetch=0,
            grid=grid,
            in_specs=[
                pl.BlockSpec((tb, PAD), lambda i: (i, 0)),                  # x tile
                pl.BlockSpec((NUM_LAYERS * PAD, PAD), lambda i: (0, 0)),    # weight slab
                pl.BlockSpec((BIAS_ROWS, PAD), lambda i: (0, 0)),           # bias slab
            ],
            out_specs=pl.BlockSpec((tb, PAD), lambda i: (i, 0)),
        ),
        compiler_params=pltpu.CompilerParams(
            dimension_semantics=("parallel",)),
        cost_estimate=pl.CostEstimate(
            flops=flops, transcendentals=0, bytes_accessed=bytes_accessed),
    )(x_p, w_slab, b_slab)

    return out[:batch, :output_size]


def init_params(input_size, output_size, key):
    """Deterministic synthetic init (PyTorch Linear-style, stored transposed)."""
    dims = (input_size,) + HIDDEN + (output_size,)
    params = []
    for i in range(NUM_LAYERS):
        fan_in, fan_out = dims[i], dims[i + 1]
        key, kw, kb = jax.random.split(key, 3)
        bound = 1.0 / (fan_in ** 0.5)
        w = jax.random.uniform(kw, (fan_in, fan_out), jnp.float32, -bound, bound)
        b = jax.random.uniform(kb, (fan_out,), jnp.float32, -bound, bound)
        params.append((w, b))
    return params


def mlp_reference_f32(x, params):
    """Pure f32 forward (PyTorch semantics)."""
    h = x
    for w, b in params:
        h = jnp.maximum(h @ w + b, 0.0)
    return h


def mlp_reference_bf16(x, params):
    """Emulates the kernel's precision: bf16 matmul operands, f32 accumulate."""
    h = x
    for w, b in params:
        h = jnp.dot(h.astype(jnp.bfloat16), w.astype(jnp.bfloat16),
                    preferred_element_type=jnp.float32)
        h = jnp.maximum(h + b, 0.0)
    return h


if __name__ == "__main__":
    key = jax.random.PRNGKey(0)
    batch, input_size, output_size = 8, 32, 10

    key, kx = jax.random.split(key)
    x = jax.random.normal(kx, (batch, input_size), jnp.float32)
    params = init_params(input_size, output_size, key)
    w_slab, b_slab = pack_params(params)

    out = mlp_forward(x, w_slab, b_slab, output_size=output_size)
    out = jax.block_until_ready(out)
    assert out.shape == (batch, output_size)

    # Tight check vs. a reference with the same bf16-operand / f32-accumulate math.
    ref_bf16 = mlp_reference_bf16(x, params)
    assert jnp.allclose(out, ref_bf16, atol=2e-3, rtol=2e-3), "mismatch vs bf16 reference"

    # Loose sanity check vs. the original pure-f32 module semantics.
    ref_f32 = mlp_reference_f32(x, params)
    assert jnp.allclose(out, ref_f32, atol=1e-1, rtol=1e-1), "mismatch vs f32 reference"

    print("KERNEL_OK")
</pallas_src>

<mosaic_0001>
module attributes {stable_mosaic.version = 11 : i64} {
  func.func @mlp_kernel(%arg0: i32, %arg1: memref<8x128xf32, #tpu.memory_space<vmem>>, %arg2: memref<896x128xbf16, #tpu.memory_space<vmem>>, %arg3: memref<8x128xf32, #tpu.memory_space<vmem>>, %arg4: memref<8x128xf32, #tpu.memory_space<vmem>>) attributes {dimension_semantics = [#tpu.dimension_semantics<parallel>], iteration_bounds = array<i64: 1>, scalar_prefetch = 0 : i64, scratch_operands = 0 : i64, tpu.core_type = #tpu.core_type<tc>, window_params = [{transform_indices = @transform_0, window_bounds = array<i64: 8, 128>}, {pipeline_mode = #tpu.pipeline_mode<synchronous>, transform_indices = @transform_1, window_bounds = array<i64: 896, 128>}, {pipeline_mode = #tpu.pipeline_mode<synchronous>, transform_indices = @transform_2, window_bounds = array<i64: 8, 128>}, {transform_indices = @transform_3, window_bounds = array<i64: 8, 128>}]} {
    %c0 = arith.constant 0 : index
    %c0_0 = arith.constant 0 : index
    %0 = vector.load %arg1[%c0, %c0_0] : memref<8x128xf32, #tpu.memory_space<vmem>>, vector<8x128xf32>
    %c0_1 = arith.constant 0 : index
    %c0_2 = arith.constant 0 : index
    %1 = vector.load %arg2[%c0_1, %c0_2] : memref<896x128xbf16, #tpu.memory_space<vmem>>, vector<128x128xbf16>
    %c0_3 = arith.constant 0 : index
    %c0_4 = arith.constant 0 : index
    %2 = vector.load %arg3[%c0_3, %c0_4] : memref<8x128xf32, #tpu.memory_space<vmem>>, vector<1x128xf32>
    %3 = arith.truncf %0 : vector<8x128xf32> to vector<8x128xbf16>
    %cst = arith.constant dense<0.000000e+00> : vector<8x128xf32>
    %4 = tpu.matmul %3, %1, %cst {dimension_numbers = #tpu.dot_dimension_numbers<[1], [0], [0], [1], [0, 0, 1, 1], [], []>} : vector<8x128xbf16>, vector<128x128xbf16>, vector<8x128xf32> -> vector<8x128xf32>
    %5 = vector.broadcast %2 : vector<1x128xf32> to vector<8x128xf32>
    %6 = arith.addf %4, %5 : vector<8x128xf32>
    %cst_5 = arith.constant 0.000000e+00 : f32
    %7 = vector.broadcast %cst_5 : f32 to vector<8x128xf32>
    %8 = arith.maximumf %6, %7 : vector<8x128xf32>
    %c128 = arith.constant 128 : index
    %c0_6 = arith.constant 0 : index
    %9 = vector.load %arg2[%c128, %c0_6] : memref<896x128xbf16, #tpu.memory_space<vmem>>, vector<128x128xbf16>
    %c1 = arith.constant 1 : index
    %c0_7 = arith.constant 0 : index
    %10 = vector.load %arg3[%c1, %c0_7] : memref<8x128xf32, #tpu.memory_space<vmem>>, vector<1x128xf32>
    %11 = arith.truncf %8 : vector<8x128xf32> to vector<8x128xbf16>
    %cst_8 = arith.constant dense<0.000000e+00> : vector<8x128xf32>
    %12 = tpu.matmul %11, %9, %cst_8 {dimension_numbers = #tpu.dot_dimension_numbers<[1], [0], [0], [1], [0, 0, 1, 1], [], []>} : vector<8x128xbf16>, vector<128x128xbf16>, vector<8x128xf32> -> vector<8x128xf32>
    %13 = vector.broadcast %10 : vector<1x128xf32> to vector<8x128xf32>
    %14 = arith.addf %12, %13 : vector<8x128xf32>
    %cst_9 = arith.constant 0.000000e+00 : f32
    %15 = vector.broadcast %cst_9 : f32 to vector<8x128xf32>
    %16 = arith.maximumf %14, %15 : vector<8x128xf32>
    %c256 = arith.constant 256 : index
    %c0_10 = arith.constant 0 : index
    %17 = vector.load %arg2[%c256, %c0_10] : memref<896x128xbf16, #tpu.memory_space<vmem>>, vector<128x128xbf16>
    %c2 = arith.constant 2 : index
    %c0_11 = arith.constant 0 : index
    %18 = vector.load %arg3[%c2, %c0_11] : memref<8x128xf32, #tpu.memory_space<vmem>>, vector<1x128xf32>
    %19 = arith.truncf %16 : vector<8x128xf32> to vector<8x128xbf16>
    %cst_12 = arith.constant dense<0.000000e+00> : vector<8x128xf32>
    %20 = tpu.matmul %19, %17, %cst_12 {dimension_numbers = #tpu.dot_dimension_numbers<[1], [0], [0], [1], [0, 0, 1, 1], [], []>} : vector<8x128xbf16>, vector<128x128xbf16>, vector<8x128xf32> -> vector<8x128xf32>
    %21 = vector.broadcast %18 : vector<1x128xf32> to vector<8x128xf32>
    %22 = arith.addf %20, %21 : vector<8x128xf32>
    %cst_13 = arith.constant 0.000000e+00 : f32
    %23 = vector.broadcast %cst_13 : f32 to vector<8x128xf32>
    %24 = arith.maximumf %22, %23 : vector<8x128xf32>
    %c384 = arith.constant 384 : index
    %c0_14 = arith.constant 0 : index
    %25 = vector.load %arg2[%c384, %c0_14] : memref<896x128xbf16, #tpu.memory_space<vmem>>, vector<128x128xbf16>
    %c3 = arith.constant 3 : index
    %c0_15 = arith.constant 0 : index
    %26 = vector.load %arg3[%c3, %c0_15] : memref<8x128xf32, #tpu.memory_space<vmem>>, vector<1x128xf32>
    %27 = arith.truncf %24 : vector<8x128xf32> to vector<8x128xbf16>
    %cst_16 = arith.constant dense<0.000000e+00> : vector<8x128xf32>
    %28 = tpu.matmul %27, %25, %cst_16 {dimension_numbers = #tpu.dot_dimension_numbers<[1], [0], [0], [1], [0, 0, 1, 1], [], []>} : vector<8x128xbf16>, vector<128x128xbf16>, vector<8x128xf32> -> vector<8x128xf32>
    %29 = vector.broadcast %26 : vector<1x128xf32> to vector<8x128xf32>
    %30 = arith.addf %28, %29 : vector<8x128xf32>
    %cst_17 = arith.constant 0.000000e+00 : f32
    %31 = vector.broadcast %cst_17 : f32 to vector<8x128xf32>
    %32 = arith.maximumf %30, %31 : vector<8x128xf32>
    %c512 = arith.constant 512 : index
    %c0_18 = arith.constant 0 : index
    %33 = vector.load %arg2[%c512, %c0_18] : memref<896x128xbf16, #tpu.memory_space<vmem>>, vector<128x128xbf16>
    %c4 = arith.constant 4 : index
    %c0_19 = arith.constant 0 : index
    %34 = vector.load %arg3[%c4, %c0_19] : memref<8x128xf32, #tpu.memory_space<vmem>>, vector<1x128xf32>
    %35 = arith.truncf %32 : vector<8x128xf32> to vector<8x128xbf16>
    %cst_20 = arith.constant dense<0.000000e+00> : vector<8x128xf32>
    %36 = tpu.matmul %35, %33, %cst_20 {dimension_numbers = #tpu.dot_dimension_numbers<[1], [0], [0], [1], [0, 0, 1, 1], [], []>} : vector<8x128xbf16>, vector<128x128xbf16>, vector<8x128xf32> -> vector<8x128xf32>
    %37 = vector.broadcast %34 : vector<1x128xf32> to vector<8x128xf32>
    %38 = arith.addf %36, %37 : vector<8x128xf32>
    %cst_21 = arith.constant 0.000000e+00 : f32
    %39 = vector.broadcast %cst_21 : f32 to vector<8x128xf32>
    %40 = arith.maximumf %38, %39 : vector<8x128xf32>
    %c640 = arith.constant 640 : index
    %c0_22 = arith.constant 0 : index
    %41 = vector.load %arg2[%c640, %c0_22] : memref<896x128xbf16, #tpu.memory_space<vmem>>, vector<128x128xbf16>
    %c5 = arith.constant 5 : index
    %c0_23 = arith.constant 0 : index
    %42 = vector.load %arg3[%c5, %c0_23] : memref<8x128xf32, #tpu.memory_space<vmem>>, vector<1x128xf32>
    %43 = arith.truncf %40 : vector<8x128xf32> to vector<8x128xbf16>
    %cst_24 = arith.constant dense<0.000000e+00> : vector<8x128xf32>
    %44 = tpu.matmul %43, %41, %cst_24 {dimension_numbers = #tpu.dot_dimension_numbers<[1], [0], [0], [1], [0, 0, 1, 1], [], []>} : vector<8x128xbf16>, vector<128x128xbf16>, vector<8x128xf32> -> vector<8x128xf32>
    %45 = vector.broadcast %42 : vector<1x128xf32> to vector<8x128xf32>
    %46 = arith.addf %44, %45 : vector<8x128xf32>
    %cst_25 = arith.constant 0.000000e+00 : f32
    %47 = vector.broadcast %cst_25 : f32 to vector<8x128xf32>
    %48 = arith.maximumf %46, %47 : vector<8x128xf32>
    %c768 = arith.constant 768 : index
    %c0_26 = arith.constant 0 : index
    %49 = vector.load %arg2[%c768, %c0_26] : memref<896x128xbf16, #tpu.memory_space<vmem>>, vector<128x128xbf16>
    %c6 = arith.constant 6 : index
    %c0_27 = arith.constant 0 : index
    %50 = vector.load %arg3[%c6, %c0_27] : memref<8x128xf32, #tpu.memory_space<vmem>>, vector<1x128xf32>
    %51 = arith.truncf %48 : vector<8x128xf32> to vector<8x128xbf16>
    %cst_28 = arith.constant dense<0.000000e+00> : vector<8x128xf32>
    %52 = tpu.matmul %51, %49, %cst_28 {dimension_numbers = #tpu.dot_dimension_numbers<[1], [0], [0], [1], [0, 0, 1, 1], [], []>} : vector<8x128xbf16>, vector<128x128xbf16>, vector<8x128xf32> -> vector<8x128xf32>
    %53 = vector.broadcast %50 : vector<1x128xf32> to vector<8x128xf32>
    %54 = arith.addf %52, %53 : vector<8x128xf32>
    %cst_29 = arith.constant 0.000000e+00 : f32
    %55 = vector.broadcast %cst_29 : f32 to vector<8x128xf32>
    %56 = arith.maximumf %54, %55 : vector<8x128xf32>
    %c0_30 = arith.constant 0 : index
    %c0_31 = arith.constant 0 : index
    %57 = vector.load %arg4[%c0_30, %c0_31] : memref<8x128xf32, #tpu.memory_space<vmem>>, vector<8x128xf32>
    tpu.vector_store %arg4[%c0_30, %c0_31], %56 {strides = array<i32>} : memref<8x128xf32, #tpu.memory_space<vmem>>, vector<8x128xf32>,
    return
  }
  func.func @transform_0(%arg0: i32) -> (i32, i32) {
    %c0_i32 = arith.constant 0 : i32
    %c0_i32_0 = arith.constant 0 : i32
    return %arg0, %c0_i32 : i32, i32
  }
  func.func @transform_1(%arg0: i32) -> (i32, i32) {
    %c0_i32 = arith.constant 0 : i32
    %c0_i32_0 = arith.constant 0 : i32
    %c0_i32_1 = arith.constant 0 : i32
    return %c0_i32, %c0_i32_0 : i32, i32
  }
  func.func @transform_2(%arg0: i32) -> (i32, i32) {
    %c0_i32 = arith.constant 0 : i32
    %c0_i32_0 = arith.constant 0 : i32
    %c0_i32_1 = arith.constant 0 : i32
    return %c0_i32, %c0_i32_0 : i32, i32
  }
  func.func @transform_3(%arg0: i32) -> (i32, i32) {
    %c0_i32 = arith.constant 0 : i32
    %c0_i32_0 = arith.constant 0 : i32
    return %arg0, %c0_i32 : i32, i32
  }
}

</mosaic_0001>

<bundles_post_ra>
// kernel: mlp_forward.1
= control target key start
LH: loop header
LB: loop body
LE: loop exit
PB: predicated region body
PF: predicated region fallthrough
CT: control target
= control target key end

     0   :  { %8 = vsyncpa [#allocation3], 0  ;;  %s1014_s0 = inlined_call_operand.vmem [shape: f32[8,128], index: 0, kind: input, shape index: {}]   ;;  %s1015_s1 = inlined_call_operand.hbm [shape: bf16[896,128], index: 1, kind: input, shape index: {}]   ;;  %s1016_s2 = inlined_call_operand.vmem [shape: f32[8,128], index: 2, kind: input, shape index: {}]   ;;  %s1017_s3 = inlined_call_operand.hbm [shape: f32[8,128], index: 3, kind: output, shape index: {}]  }
   0x1   :  { %9 = vsyncpa [#allocation4], 0  ;;  %s16_s14 = sshll.u32 %s1015_s1, 4  ;;  %s960_s15 = smov [#allocation2]   ;;  %s17_s14 = int_to_ptr.hbm [resolvable:$true] %s16_s14 }
   0x2   :  { %s18_s16 = sshll.u32 %s960_s15, 4  ;;  %s961_s17 = smov 64   ;;  %s19_s16 = int_to_ptr.vmem [resolvable:$true] %s18_s16 }
   0x3   :  { %s962_s18 = smov 4  }
   0x4   :  { %24 = dma.hbm_to_vmem [thread:$0]  %s17_s14, 7168, %s19_s16, [#allocation3], %s961_s17, %s961_s17, %s962_s18  }
   0x5   :  { %956 = dma.done.wait [#allocation3], 7168  }
   0x6   :  { %957 = vsyncadd [#allocation3], 4294960128  ;;  %v848_v0 = vld [vmem:[#allocation2 + $0x38] sm:$0xff]  ;;  %v847_v1 = vld [vmem:[#allocation2 + $0x30] sm:$0xff]  ;;  %s963_s6 = smov [#allocation5]   ;;  %s607_s10 = sshll.u32 %s1017_s3, 4  ;;  %s608_s10 = int_to_ptr.hbm [resolvable:$true] %s607_s10 }
   0x7   :  { %99 = vmatpush.bf16.msra.mxu0 %v848_v0  ;;  %v856_v2 = vld [vmem:[#allocation2 + $0x78] sm:$0xff]  ;;  %v846_v3 = vld [vmem:[#allocation2 + $0x28] sm:$0xff]  ;;  %v855_v4 = vld [vmem:[#allocation2 + $0x70] sm:$0xff]  ;;  %s605_s7 = sshll.u32 %s963_s6, 4  ;;  %s606_s7 = int_to_ptr.vmem [resolvable:$true] %s605_s7 }
   0x8   :  { %180 = vmatpush.bf16.msra.mxu1 %v856_v2  ;;  %v854_v5 = vld [vmem:[#allocation2 + $0x68] sm:$0xff]  ;;  %v845_v6 = vld [vmem:[#allocation2 + $0x20] sm:$0xff]  ;;  %v844_v8 = vld [vmem:[#allocation2 + $0x18] sm:$0xff] }
   0x9   :  { %v853_v7 = vld [vmem:[#allocation2 + $0x60] sm:$0xff]  ;;  %v852_v9 = vld [vmem:[#allocation2 + $0x58] sm:$0xff]  ;;  %v843_v10 = vld [vmem:[#allocation2 + $0x10] sm:$0xff] }
   0xa   :  { %v851_v11 = vld [vmem:[#allocation2 + $0x50] sm:$0xff]  ;;  %v842_v12 = vld [vmem:[#allocation2 + $0x8] sm:$0xff]  ;;  %v841_v13 = vld [vmem:[#allocation2] sm:$0xff] }
   0xb   :  { %100 = vmatpush.bf16.msra.mxu0 %v847_v1  ;;  %v31_v14 = vld [vmem:[%s1014_s0] sm:$0xff]  ;;  %v850_v16 = vld [vmem:[#allocation2 + $0x48] sm:$0xff]  ;;  %v864_v18 = vld [vmem:[#allocation2 + $0xb8] sm:$0xff] }
   0xc   :  { %181 = vmatpush.bf16.msra.mxu1 %v855_v4  ;;  %v49_v15 = vpack.c.bf16 %v31_v14, %v31_v14  ;;  %v849_v17 = vld [vmem:[#allocation2 + $0x40] sm:$0xff]  ;;  %261 = vmatpush.bf16.msra.mxu2 %v864_v18  ;;  %v863_v19 = vld [vmem:[#allocation2 + $0xb0] sm:$0xff]  ;;  %v862_v20 = vld [vmem:[#allocation2 + $0xa8] sm:$0xff] }
   0xd   :  { %v861_v21 = vld [vmem:[#allocation2 + $0xa0] sm:$0xff]  ;;  %v860_v22 = vld [vmem:[#allocation2 + $0x98] sm:$0xff]  ;;  %v859_v23 = vld [vmem:[#allocation2 + $0x90] sm:$0xff] }
   0xe   :  { %v901_v24 = vld [vmem:[%s1016_s2] ss:$0 sm:$0xff]  ;;  %v858_v30 = vld [vmem:[#allocation2 + $0x88] sm:$0xff]  ;;  %v872_v32 = vld [vmem:[#allocation2 + $0xf8] sm:$0xff] }
   0xf   :  { %101 = vmatpush.bf16.msra.mxu0 %v846_v3  ;;  %v857_v31 = vld [vmem:[#allocation2 + $0x80] sm:$0xff]  ;;  %342 = vmatpush.bf16.msra.mxu3 %v872_v32  ;;  %v871_v33 = vld [vmem:[#allocation2 + $0xf0] sm:$0xff]  ;;  %v870_v34 = vld [vmem:[#allocation2 + $0xe8] sm:$0xff] }
  0x10   :  { %182 = vmatpush.bf16.msra.mxu1 %v854_v5  ;;  %262 = vmatpush.bf16.msra.mxu2 %v863_v19  ;;  %v869_v35 = vld [vmem:[#allocation2 + $0xe0] sm:$0xff]  ;;  %v868_v36 = vld [vmem:[#allocation2 + $0xd8] sm:$0xff]  ;;  %v867_v37 = vld [vmem:[#allocation2 + $0xd0] sm:$0xff] }
  0x11   :  { %v902_v38 = vld [vmem:[%s1016_s2 + $0x1] ss:$0 sm:$0xff]  ;;  %v866_v44 = vld [vmem:[#allocation2 + $0xc8] sm:$0xff]  ;;  %v880_v46 = vld [vmem:[#allocation2 + $0x138] sm:$0xff] }
  0x12   :  { %v865_v45 = vld [vmem:[#allocation2 + $0xc0] sm:$0xff]  ;;  %v879_v47 = vld [vmem:[#allocation2 + $0x130] sm:$0xff]  ;;  %v878_v48 = vld [vmem:[#allocation2 + $0x128] sm:$0xff] }
  0x13   :  { %102 = vmatpush.bf16.msra.mxu0 %v845_v6  ;;  %343 = vmatpush.bf16.msra.mxu3 %v871_v33  ;;  %v877_v49 = vld [vmem:[#allocation2 + $0x120] sm:$0xff]  ;;  %v876_v50 = vld [vmem:[#allocation2 + $0x118] sm:$0xff]  ;;  %v875_v51 = vld [vmem:[#allocation2 + $0x110] sm:$0xff] }
  0x14   :  { %183 = vmatpush.bf16.msra.mxu1 %v853_v7  ;;  %263 = vmatpush.bf16.msra.mxu2 %v862_v20  ;;  %v903_v52 = vld [vmem:[%s1016_s2 + $0x2] ss:$0 sm:$0xff]  ;;  %v874_v58 = vld [vmem:[#allocation2 + $0x108] sm:$0xff]  ;;  %v888_v60 = vld [vmem:[#allocation2 + $0x178] sm:$0xff] }
  0x15   :  { %v873_v59 = vld [vmem:[#allocation2 + $0x100] sm:$0xff]  ;;  %v887_v61 = vld [vmem:[#allocation2 + $0x170] sm:$0xff]  ;;  %v886_v62 = vld [vmem:[#allocation2 + $0x168] sm:$0xff] }
  0x16   :  { %v885_v63 = vld [vmem:[#allocation2 + $0x160] sm:$0xff]  ;;  %v884_v0 = vld [vmem:[#allocation2 + $0x158] sm:$0xff]  ;;  %v883_v1 = vld [vmem:[#allocation2 + $0x150] sm:$0xff] }
  0x17   :  { %103 = vmatpush.bf16.msra.mxu0 %v844_v8  ;;  %344 = vmatpush.bf16.msra.mxu3 %v870_v34  ;;  %v904_v2 = vld [vmem:[%s1016_s2 + $0x3] ss:$0 sm:$0xff]  ;;  %v882_v8 = vld [vmem:[#allocation2 + $0x148] sm:$0xff]  ;;  %v892_v14 = vld [vmem:[#allocation2 + $0x198] sm:$0xff] }
  0x18   :  { %184 = vmatpush.bf16.msra.mxu1 %v852_v9  ;;  %264 = vmatpush.bf16.msra.mxu2 %v861_v21  ;;  %v881_v9 = vld [vmem:[#allocation2 + $0x140] sm:$0xff] }
  0x1b   :  { %104 = vmatpush.bf16.msra.mxu0 %v843_v10  ;;  %345 = vmatpush.bf16.msra.mxu3 %v869_v35  ;;  %v896_v10 = vld [vmem:[#allocation2 + $0x1b8] sm:$0xff] }
  0x1c   :  { %185 = vmatpush.bf16.msra.mxu1 %v851_v11  ;;  %265 = vmatpush.bf16.msra.mxu2 %v860_v22  ;;  %v895_v11 = vld [vmem:[#allocation2 + $0x1b0] sm:$0xff]  ;;  %v890_v22 = vld [vmem:[#allocation2 + $0x188] sm:$0xff] }
  0x1f   :  { %105 = vmatpush.bf16.msra.mxu0 %v842_v12  ;;  %346 = vmatpush.bf16.msra.mxu3 %v868_v36  ;;  %v894_v12 = vld [vmem:[#allocation2 + $0x1a8] sm:$0xff] }
  0x20   :  { %186 = vmatpush.bf16.msra.mxu1 %v850_v16  ;;  %266 = vmatpush.bf16.msra.mxu2 %v859_v23  ;;  %v905_v16 = vld [vmem:[%s1016_s2 + $0x4] ss:$0 sm:$0xff] }
  0x21   :  { %v889_v23 = vld [vmem:[#allocation2 + $0x180] sm:$0xff] }
  0x23   :  { %106 = vmatpush.bf16.msra.mxu0 %v841_v13  ;;  %347 = vmatpush.bf16.msra.mxu3 %v867_v37  ;;  %v893_v13 = vld [vmem:[#allocation2 + $0x1a0] sm:$0xff] }
  0x24   :  { %187 = vmatpush.bf16.msra.mxu1 %v849_v17  ;;  %267 = vmatpush.bf16.msra.mxu2 %v858_v30  ;;  %v907_v30 = vld [vmem:[%s1016_s2 + $0x6] ss:$0 sm:$0xff] }
  0x26   :  { %107 = vmatmul.bf16.vlgmr.msra.gmra.mxu0 %v49_v15  ;;  %v891_v15 = vld [vmem:[#allocation2 + $0x190] sm:$0xff] }
  0x27   :  { %348 = vmatpush.bf16.msra.mxu3 %v866_v44  ;;  %423 = vmatpush.bf16.msrb.mxu0 %v880_v46 }
  0x28   :  { %268 = vmatpush.bf16.msra.mxu2 %v857_v31  ;;  %504 = vmatpush.bf16.msrb.mxu1 %v888_v60 }
  0x2b   :  { %349 = vmatpush.bf16.msra.mxu3 %v865_v45  ;;  %424 = vmatpush.bf16.msrb.mxu0 %v879_v47 }
  0x2c   :  { %505 = vmatpush.bf16.msrb.mxu1 %v887_v61  ;;  %585 = vmatpush.bf16.msrb.mxu2 %v896_v10 }
  0x2f   :  { %425 = vmatpush.bf16.msrb.mxu0 %v878_v48 }
  0x30   :  { %506 = vmatpush.bf16.msrb.mxu1 %v886_v62  ;;  %586 = vmatpush.bf16.msrb.mxu2 %v895_v11 }
  0x33   :  { %426 = vmatpush.bf16.msrb.mxu0 %v877_v49 }
  0x34   :  { %507 = vmatpush.bf16.msrb.mxu1 %v885_v63  ;;  %587 = vmatpush.bf16.msrb.mxu2 %v894_v12 }
  0x37   :  { %427 = vmatpush.bf16.msrb.mxu0 %v876_v50 }
  0x38   :  { %508 = vmatpush.bf16.msrb.mxu1 %v884_v0  ;;  %588 = vmatpush.bf16.msrb.mxu2 %v893_v13 }
  0x3b   :  { %428 = vmatpush.bf16.msrb.mxu0 %v875_v51 }
  0x3c   :  { %509 = vmatpush.bf16.msrb.mxu1 %v883_v1  ;;  %589 = vmatpush.bf16.msrb.mxu2 %v892_v14 }
  0x3f   :  { %429 = vmatpush.bf16.msrb.mxu0 %v874_v58 }
  0x40   :  { %510 = vmatpush.bf16.msrb.mxu1 %v882_v8  ;;  %590 = vmatpush.bf16.msrb.mxu2 %v891_v15 }
  0x43   :  { %430 = vmatpush.bf16.msrb.mxu0 %v873_v59 }
  0x44   :  { %511 = vmatpush.bf16.msrb.mxu1 %v881_v9  ;;  %591 = vmatpush.bf16.msrb.mxu2 %v890_v22 }
  0x48   :  { %592 = vmatpush.bf16.msrb.mxu2 %v889_v23 }
  0xa3   :  { %v108_v25 = vpop.f32.mrf.mxu0 }
  0xa4   :  { %v109_v26 = vadd.f32 %v901_v24, %v108_v25  ;;  %v906_v24 = vld [vmem:[%s1016_s2 + $0x5] ss:$0 sm:$0xff] }
  0xa6   :  { %v112_v27 = vmax.f32 %v109_v26, 0.0 }
  0xa8   :  { %v130_v28 = vpack.c.bf16 %v112_v27, %v112_v27 }
  0xaa   :  { %188 = vmatmul.bf16.vlgmr.msra.gmra.mxu1 %v130_v28 }
  0xab   :  { %v110_v29 = vpop.f32.mrf.mxu0 }
 0x127   :  { %v189_v39 = vpop.f32.mrf.mxu1 }
 0x128   :  { %v190_v40 = vadd.f32 %v902_v38, %v189_v39 }
 0x12a   :  { %v193_v41 = vmax.f32 %v190_v40, 0.0 }
 0x12c   :  { %v211_v42 = vpack.c.bf16 %v193_v41, %v193_v41 }
 0x12e   :  { %269 = vmatmul.bf16.vlgmr.msra.gmra.mxu2 %v211_v42 }
 0x12f   :  { %v191_v43 = vpop.f32.mrf.mxu1 }
 0x1b1   :  { %v270_v53 = vpop.f32.mrf.mxu2 }
 0x1b2   :  { %v271_v54 = vadd.f32 %v903_v52, %v270_v53 }
 0x1b4   :  { %v274_v55 = vmax.f32 %v271_v54, 0.0 }
 0x1b6   :  { %v292_v56 = vpack.c.bf16 %v274_v55, %v274_v55 }
 0x1b8   :  { %350 = vmatmul.bf16.vlgmr.msra.gmra.mxu3 %v292_v56 }
 0x1b9   :  { %v272_v57 = vpop.f32.mrf.mxu2 }
 0x23b   :  { %v351_v3 = vpop.f32.mrf.mxu3 }
 0x23c   :  { %v352_v4 = vadd.f32 %v904_v2, %v351_v3 }
 0x23e   :  { %v355_v5 = vmax.f32 %v352_v4, 0.0 }
 0x240   :  { %v373_v6 = vpack.c.bf16 %v355_v5, %v355_v5 }
 0x242   :  { %431 = vmatmul.bf16.vlgmr.msrb.gmra.mxu0 %v373_v6 }
 0x243   :  { %v353_v7 = vpop.f32.mrf.mxu3 }
 0x2bf   :  { %v432_v17 = vpop.f32.mrf.mxu0 }
 0x2c0   :  { %v433_v18 = vadd.f32 %v905_v16, %v432_v17 }
 0x2c2   :  { %v436_v19 = vmax.f32 %v433_v18, 0.0 }
 0x2c4   :  { %v454_v20 = vpack.c.bf16 %v436_v19, %v436_v19 }
 0x2c6   :  { %512 = vmatmul.bf16.vlgmr.msrb.gmra.mxu1 %v454_v20 }
 0x2c7   :  { %v434_v21 = vpop.f32.mrf.mxu0 }
 0x343   :  { %v513_v25 = vpop.f32.mrf.mxu1 }
 0x344   :  { %v514_v26 = vadd.f32 %v906_v24, %v513_v25 }
 0x346   :  { %v517_v27 = vmax.f32 %v514_v26, 0.0 }
 0x348   :  { %v535_v28 = vpack.c.bf16 %v517_v27, %v517_v27 }
 0x34a   :  { %593 = vmatmul.bf16.vlgmr.msrb.gmra.mxu2 %v535_v28 }
 0x34b   :  { %v515_v29 = vpop.f32.mrf.mxu1 }
 0x3cd   :  { %v594_v31 = vpop.f32.mrf.mxu2 }
 0x3ce   :  { %v595_v32 = vadd.f32 %v907_v30, %v594_v31 }
 0x3d0   :  { %v598_v33 = vmax.f32 %v595_v32, 0.0 }
 0x3d2   :  { %599 = vst [vmem:[#allocation5] sm:$0xff] %v598_v33 }
 0x3d3   :  { %610 = dma.vmem_to_hbm [thread:$0]  %s606_s7, 128, %s608_s10, [#allocation4]  }
 0x3d5   :  { %v596_v34 = vpop.f32.mrf.mxu2 }
 0x3d6   :  { %958 = dma.done.wait [#allocation4], 128  }
 0x3d7   :  { %959 = vsyncadd [#allocation4], 4294967168 }
 0x3d8   :  { %615 = vsyncpa [#allocation3], 1 }
 0x3d9   :  { %616 = vsyncpa [#allocation4], 1 }

</bundles_post_ra>
